<compile_context>
chip_gen: v5e
topology: v5e:2x2
jax: 0.10.0
libtpu: 0.0.40
codegen_flags: <defaults>
</compile_context>

<pallas_src>
import functools

import jax
import jax.numpy as jnp
from jax.experimental import pallas as pl
from jax.experimental.pallas import tpu as pltpu

_EPS = 1e-5
_MXU_DTYPE = jnp.bfloat16  # matmul operand dtype; accumulation is always f32


def _round_up(v, m):
    return (v + m - 1) // m * m


def _pad_dim(d):
    # Tiny dims -> 128; otherwise pad to a multiple of 256 so _pick_tile never
    # collapses to 128 (keeps the 256-wide MXU on v6e/v7x well fed).
    return _round_up(d, 128) if d <= 128 else _round_up(d, 256)


def _pick_tile(dim, cap):
    """Largest multiple of 128 <= cap that divides `dim` (dim is a multiple of 128)."""
    t = min(cap, dim)
    while dim % t:
        t -= 128
    return t


def _vmem_budget_bytes():
    """~3/4 of physical VMEM (96-100 MiB on 128 MiB v5e/v6e, ~50 MiB on 64 MiB v7x)."""
    try:
        info = pltpu.get_tpu_info()
        phys = getattr(info, "vmem_capacity_bytes", 64 * 1024 * 1024)
    except Exception:  # interpret mode / older runtimes
        phys = 64 * 1024 * 1024
    return min(int(phys * 0.78), 100 * 1024 * 1024)


# ---------------------------------------------------------------------------
# Pass 1: full-batch BN statistics, accumulating over batch tiles.
#   grid = (feature tiles, batch tiles); batch (reduction) axis last.
#   acc scratch holds [sum; sum_sq]; finalize -> [mean; rsqrt(var+eps)].
# Padded (zero) batch rows contribute nothing to either sum, so dividing by the
# TRUE batch size keeps the statistics exact.
# ---------------------------------------------------------------------------
def _bn_stats_kernel(x_ref, stats_ref, acc_ref, *, batch):
    b = pl.program_id(1)

    @pl.when(b == 0)
    def _():
        acc_ref[...] = jnp.zeros_like(acc_ref)

    x = x_ref[...].astype(jnp.float32)                         # (tb, ts)
    acc_ref[0:1, :] += jnp.sum(x, axis=0, keepdims=True)       # running sum
    acc_ref[1:2, :] += jnp.sum(x * x, axis=0, keepdims=True)   # running sum of squares

    @pl.when(b == pl.num_programs(1) - 1)
    def _():
        inv_b = jnp.float32(1.0 / batch)
        mean = acc_ref[0:1, :] * inv_b
        var = acc_ref[1:2, :] * inv_b - mean * mean            # biased var (BN training stats)
        stats_ref[0:1, :] = mean
        stats_ref[1:2, :] = jax.lax.rsqrt(jnp.maximum(var, 0.0) + _EPS)


# ---------------------------------------------------------------------------
# Pass 2: fused  BN-normalize (cached per i-tile) -> single folded matmul -> + bias.
#   y = xn @ (W0+W1)^T + (rowsum(W0) - rowsum(W1) + bias)
# ---------------------------------------------------------------------------
def _fused_fwd_kernel(x_ref, stats_ref, w_ref, bias_ref, o_ref, acc_ref, xn_ref, *, tk):
    j = pl.program_id(1)
    k = pl.program_id(2)

    # Normalize + bf16-pack the WHOLE resident x slab once per i-tile (its first
    # (j,k) step); every subsequent (j,k) step reuses the cached bf16 scratch.
    # Centered normalize is kept (vs. folding mean into bias) for bf16 accuracy.
    @pl.when(jnp.logical_and(j == 0, k == 0))
    def _():
        mean = stats_ref[0:1, :]
        inv_std = stats_ref[1:2, :]
        xn_ref[...] = ((x_ref[...] - mean) * inv_std).astype(_MXU_DTYPE)

    @pl.when(k == 0)
    def _():
        acc_ref[...] = jnp.zeros_like(acc_ref)

    off = pl.multiple_of(k * tk, tk)
    acc_ref[...] += jnp.dot(xn_ref[:, pl.ds(off, tk)], w_ref[...],
                            preferred_element_type=jnp.float32)

    @pl.when(k == pl.num_programs(2) - 1)
    def _():
        o_ref[...] = (acc_ref[...] + bias_ref[...]).astype(o_ref.dtype)


# ---------------------------------------------------------------------------
# One-time parameter preparation (keep OUT of the per-call path).
# ---------------------------------------------------------------------------
def prepare_params(w0, w1, bias):
    """w0/w1: (F_out, F_in) PyTorch layout; bias: (F_out,) or None.

    Returns:
      w_fold:   (F_in_pad, F_out_pad) bf16  == pad((W0 + W1)^T)
      bias_eff: (1, F_out_pad)        f32   == pad(bias + rowsum(W0) - rowsum(W1))
    """
    F_out, F_in = w0.shape
    f_in_pad = _pad_dim(F_in)
    f_out_pad = _pad_dim(F_out)

    w_fold = (w0.astype(jnp.float32) + w1.astype(jnp.float32)).T          # (F_in, F_out)
    w_fold = jnp.pad(w_fold, ((0, f_in_pad - F_in), (0, f_out_pad - F_out)))
    w_fold = w_fold.astype(_MXU_DTYPE)

    b = jnp.zeros((F_out,), jnp.float32) if bias is None else bias.astype(jnp.float32)
    bias_eff = (b + jnp.sum(w0.astype(jnp.float32), axis=1)
                  - jnp.sum(w1.astype(jnp.float32), axis=1))
    bias_eff = jnp.pad(bias_eff, (0, f_out_pad - F_out)).reshape(1, f_out_pad)
    return w_fold, bias_eff


@functools.partial(jax.jit, static_argnames=("out_features",))
def yagaodirac_linear_forward(x, w_fold, bias_eff, *, out_features):
    """x: (B, F_in); w_fold/bias_eff from prepare_params."""
    B, F_in = x.shape
    F_in_pad, F_out_pad = w_fold.shape
    budget = _vmem_budget_bytes()

    # ---- tile selection (VMEM-budget driven, per generation) --------------
    tn = _pick_tile(F_out_pad, 512)
    tk = _pick_tile(F_in_pad, 512)
    out_isz = jnp.dtype(x.dtype).itemsize

    # Steady-state VMEM per grid step of pass 2:
    #   x f32 slab (double-buffered)  : 2 * tm * F_in_pad * 4
    #   xn bf16 scratch (cached slab) :     tm * F_in_pad * 2
    #   weights bf16 (double-buffered): 2 * tk * tn * 2
    #   f32 accumulator               :     tm * tn * 4
    #   output (double-buffered)      : 2 * tm * tn * out_isz
    #   bias + BN stats (resident)    : tiny
    fixed = 2 * tk * tn * 2 + 2 * tn * 4 + 2 * 2 * F_in_pad * 4
    per_tm = 2 * F_in_pad * 4 + F_in_pad * 2 + tn * 4 + 2 * tn * out_isz
    headroom = 4 * 1024 * 1024  # compiler-internal scratch
    tm_budget = max(8, (budget - headroom - fixed) // per_tm)
    tm = int(min(1024, tm_budget, _round_up(B, 8)))
    tm = max(8, (tm // 8) * 8)
    if tm >= 128:
        tm = (tm // 128) * 128  # keep MXU-friendly when batch is large
    B_pad = _round_up(B, tm)

    # ---- one (single) pad / cast pass over x -------------------------------
    x_f32 = x if x.dtype == jnp.float32 else x.astype(jnp.float32)
    pad_b, pad_f = B_pad - B, F_in_pad - F_in
    x_p = jnp.pad(x_f32, ((0, pad_b), (0, pad_f))) if (pad_b or pad_f) else x_f32

    # ---- pass 1: accumulating full-batch BN statistics ---------------------
    ts = _pick_tile(F_in_pad, 1024)
    tb = tm  # B_pad % tm == 0 by construction
    stats = pl.pallas_call(
        functools.partial(_bn_stats_kernel, batch=B),
        out_shape=jax.ShapeDtypeStruct((2, F_in_pad), jnp.float32),
        grid_spec=pltpu.PrefetchScalarGridSpec(
            num_scalar_prefetch=0,
            grid=(F_in_pad // ts, B_pad // tb),
            in_specs=[pl.BlockSpec((tb, ts), lambda f, b: (b, f))],
            out_specs=pl.BlockSpec((2, ts), lambda f, b: (0, f)),
            scratch_shapes=[pltpu.VMEM((2, ts), jnp.float32)],
        ),
        compiler_params=pltpu.CompilerParams(
            dimension_semantics=("parallel", "arbitrary"),
            vmem_limit_bytes=budget,
        ),
    )(x_p)

    # ---- pass 2: fused normalize (cached) + folded matmul + bias -----------
    grid = (B_pad // tm, F_out_pad // tn, F_in_pad // tk)
    out_p = pl.pallas_call(
        functools.partial(_fused_fwd_kernel, tk=tk),
        out_shape=jax.ShapeDtypeStruct((B_pad, F_out_pad), x.dtype),
        grid_spec=pltpu.PrefetchScalarGridSpec(
            num_scalar_prefetch=0,
            grid=grid,
            in_specs=[
                pl.BlockSpec((tm, F_in_pad), lambda i, j, k: (i, 0)),  # x slab: 1 DMA per i-tile
                pl.BlockSpec((2, F_in_pad), lambda i, j, k: (0, 0)),   # BN stats: resident
                pl.BlockSpec((tk, tn), lambda i, j, k: (k, j)),        # streamed bf16 weights
                pl.BlockSpec((1, tn), lambda i, j, k: (0, j)),         # folded bias
            ],
            out_specs=pl.BlockSpec((tm, tn), lambda i, j, k: (i, j)),  # lane-dense (tn % 128 == 0)
            scratch_shapes=[
                pltpu.VMEM((tm, tn), jnp.float32),       # f32 accumulator
                pltpu.VMEM((tm, F_in_pad), _MXU_DTYPE),  # cached normalized bf16 x slab
            ],
        ),
        compiler_params=pltpu.CompilerParams(
            # j must be "arbitrary": the xn cache is filled at (j==0, k==0) and every
            # core must run that step for each i-tile it owns; megacore only shards
            # "parallel" axes, so i stays parallel (v7x megacore for large B).
            dimension_semantics=("parallel", "arbitrary", "arbitrary"),
            vmem_limit_bytes=budget,
        ),
    )(x_p, stats, w_fold, bias_eff)

    return out_p[:B, :out_features]


# ---------------------------------------------------------------------------
# Pure-JAX reference of the training-mode forward.
# ---------------------------------------------------------------------------
def _reference(x, w0, w1, bias):
    mean = jnp.mean(x, axis=0, keepdims=True)
    var = jnp.mean((x - mean) ** 2, axis=0, keepdims=True)
    xn = (x - mean) / jnp.sqrt(var + _EPS)
    return (xn + 1.0) @ w0.T + (xn - 1.0) @ w1.T + bias


def _run_case(key, B, F_in, F_out, diverge_w1):
    kx, kw, kb, kd = jax.random.split(key, 4)
    # Parameter init mirroring the module: linear_layer_gen weight; _to_train_mode():
    #   W0 = W/2, W1 = W0.clone(); bias = torch.rand(out_features).
    w_init = jax.random.uniform(kw, (F_out, F_in), jnp.float32, minval=-0.2, maxval=0.2)
    w0 = w_init / 2.0
    w1 = w0 + (0.01 * jax.random.normal(kd, (F_out, F_in), jnp.float32) if diverge_w1 else 0.0)
    bias = jax.random.uniform(kb, (F_out,), jnp.float32)
    x = jax.random.normal(kx, (B, F_in), jnp.float32)

    w_fold, bias_eff = prepare_params(w0, w1, bias)
    out = yagaodirac_linear_forward(x, w_fold, bias_eff, out_features=F_out)
    out = jax.block_until_ready(out)

    ref = _reference(x, w0, w1, bias)
    assert out.shape == (B, F_out)
    # bf16 MXU operands (f32 accumulate) -> compare against the f32 reference loosely.
    err = jnp.max(jnp.abs(out - ref))
    assert jnp.allclose(out, ref, atol=5e-2, rtol=5e-2), f"max abs err = {err}"


if __name__ == "__main__":
    key = jax.random.PRNGKey(0)
    k0, k1 = jax.random.split(key)
    # Small shape matching the module defaults (w1 == w0 as right after _to_train_mode()).
    _run_case(k0, B=8, F_in=32, F_out=64, diverge_w1=False)
    # Slightly larger shape: exercises feature padding, multi-i-tile grid, the
    # accumulating BN-stats pass and a non-trivial bias fold (w1 != w0).
    _run_case(k1, B=300, F_in=160, F_out=192, diverge_w1=True)
    print("KERNEL_OK")
</pallas_src>

<mosaic_0001>
module attributes {stable_mosaic.version = 11 : i64} {
  func.func @_fused_fwd_kernel(%arg0: i32, %arg1: i32, %arg2: i32, %arg3: memref<8x128xf32, #tpu.memory_space<vmem>>, %arg4: memref<2x128xf32, #tpu.memory_space<vmem>>, %arg5: memref<128x128xbf16, #tpu.memory_space<vmem>>, %arg6: memref<1x128xf32, #tpu.memory_space<vmem>>, %arg7: memref<8x128xf32, #tpu.memory_space<vmem>>, %arg8: memref<8x128xf32, #tpu.memory_space<vmem>>, %arg9: memref<8x128xbf16, #tpu.memory_space<vmem>>) attributes {dimension_semantics = [#tpu.dimension_semantics<parallel>, #tpu.dimension_semantics<arbitrary>, #tpu.dimension_semantics<arbitrary>], iteration_bounds = array<i64: 1, 1, 1>, scalar_prefetch = 0 : i64, scratch_operands = 2 : i64, tpu.core_type = #tpu.core_type<tc>, window_params = [{transform_indices = @transform_0, window_bounds = array<i64: 8, 128>}, {pipeline_mode = #tpu.pipeline_mode<synchronous>, transform_indices = @transform_1, window_bounds = array<i64: 2, 128>}, {transform_indices = @transform_2, window_bounds = array<i64: 128, 128>}, {transform_indices = @transform_3, window_bounds = array<i64: 1, 128>}, {transform_indices = @transform_4, window_bounds = array<i64: 8, 128>}]} {
    %c0_i32 = arith.constant 0 : i32
    %0 = arith.cmpi eq, %arg1, %c0_i32 : i32
    %c0_i32_0 = arith.constant 0 : i32
    %1 = arith.cmpi eq, %arg2, %c0_i32_0 : i32
    %2 = arith.andi %0, %1 : i1
    %3 = arith.extui %2 : i1 to i32
    %c0_i32_1 = arith.constant 0 : i32
    %4 = arith.cmpi ne, %3, %c0_i32_1 : i32
    scf.if %4 {
      %c0_12 = arith.constant 0 : index
      %c0_13 = arith.constant 0 : index
      %20 = vector.load %arg4[%c0_12, %c0_13] : memref<2x128xf32, #tpu.memory_space<vmem>>, vector<1x128xf32>
      %c1 = arith.constant 1 : index
      %c0_14 = arith.constant 0 : index
      %21 = vector.load %arg4[%c1, %c0_14] : memref<2x128xf32, #tpu.memory_space<vmem>>, vector<1x128xf32>
      %c0_15 = arith.constant 0 : index
      %c0_16 = arith.constant 0 : index
      %22 = vector.load %arg3[%c0_15, %c0_16] : memref<8x128xf32, #tpu.memory_space<vmem>>, vector<8x128xf32>
      %23 = vector.broadcast %20 : vector<1x128xf32> to vector<8x128xf32>
      %24 = arith.subf %22, %23 : vector<8x128xf32>
      %25 = vector.broadcast %21 : vector<1x128xf32> to vector<8x128xf32>
      %26 = arith.mulf %24, %25 : vector<8x128xf32>
      %27 = arith.truncf %26 : vector<8x128xf32> to vector<8x128xbf16>
      %c0_17 = arith.constant 0 : index
      %c0_18 = arith.constant 0 : index
      %28 = vector.load %arg9[%c0_17, %c0_18] : memref<8x128xbf16, #tpu.memory_space<vmem>>, vector<8x128xbf16>
      tpu.vector_store %arg9[%c0_17, %c0_18], %27 {strides = array<i32>} : memref<8x128xbf16, #tpu.memory_space<vmem>>, vector<8x128xbf16>,
    } else {
    }
    %c0_i32_2 = arith.constant 0 : i32
    %5 = arith.cmpi eq, %arg2, %c0_i32_2 : i32
    %6 = arith.extui %5 : i1 to i32
    %c0_i32_3 = arith.constant 0 : i32
    %7 = arith.cmpi ne, %6, %c0_i32_3 : i32
    scf.if %7 {
      %cst_12 = arith.constant 0.000000e+00 : f32
      %20 = vector.broadcast %cst_12 : f32 to vector<8x128xf32>
      %c0_13 = arith.constant 0 : index
      %c0_14 = arith.constant 0 : index
      %21 = vector.load %arg8[%c0_13, %c0_14] : memref<8x128xf32, #tpu.memory_space<vmem>>, vector<8x128xf32>
      tpu.vector_store %arg8[%c0_13, %c0_14], %20 {strides = array<i32>} : memref<8x128xf32, #tpu.memory_space<vmem>>, vector<8x128xf32>,
    } else {
    }
    %c128_i32 = arith.constant 128 : i32
    %8 = arith.muli %arg2, %c128_i32 : i32
    %9 = tpu.assume_multiple %8, 128 : i32
    %c0 = arith.constant 0 : index
    %c0_4 = arith.constant 0 : index
    %10 = vector.load %arg8[%c0, %c0_4] : memref<8x128xf32, #tpu.memory_space<vmem>>, vector<8x128xf32>
    %c0_5 = arith.constant 0 : index
    %11 = arith.index_cast %9 : i32 to index
    %12 = vector.load %arg9[%c0_5, %11] : memref<8x128xbf16, #tpu.memory_space<vmem>>, vector<8x128xbf16>
    %c0_6 = arith.constant 0 : index
    %c0_7 = arith.constant 0 : index
    %13 = vector.load %arg5[%c0_6, %c0_7] : memref<128x128xbf16, #tpu.memory_space<vmem>>, vector<128x128xbf16>
    %cst = arith.constant dense<0.000000e+00> : vector<8x128xf32>
    %14 = tpu.matmul %12, %13, %cst {dimension_numbers = #tpu.dot_dimension_numbers<[1], [0], [0], [1], [0, 0, 1, 1], [], []>} : vector<8x128xbf16>, vector<128x128xbf16>, vector<8x128xf32> -> vector<8x128xf32>
    %15 = arith.addf %10, %14 : vector<8x128xf32>
    %c0_8 = arith.constant 0 : index
    %c0_9 = arith.constant 0 : index
    %16 = vector.load %arg8[%c0_8, %c0_9] : memref<8x128xf32, #tpu.memory_space<vmem>>, vector<8x128xf32>
    tpu.vector_store %arg8[%c0_8, %c0_9], %15 {strides = array<i32>} : memref<8x128xf32, #tpu.memory_space<vmem>>, vector<8x128xf32>,
    %c0_i32_10 = arith.constant 0 : i32
    %17 = arith.cmpi eq, %arg2, %c0_i32_10 : i32
    %18 = arith.extui %17 : i1 to i32
    %c0_i32_11 = arith.constant 0 : i32
    %19 = arith.cmpi ne, %18, %c0_i32_11 : i32
    scf.if %19 {
      %c0_12 = arith.constant 0 : index
      %c0_13 = arith.constant 0 : index
      %20 = vector.load %arg8[%c0_12, %c0_13] : memref<8x128xf32, #tpu.memory_space<vmem>>, vector<8x128xf32>
      %c0_14 = arith.constant 0 : index
      %c0_15 = arith.constant 0 : index
      %21 = vector.load %arg6[%c0_14, %c0_15] : memref<1x128xf32, #tpu.memory_space<vmem>>, vector<1x128xf32>
      %22 = vector.broadcast %21 : vector<1x128xf32> to vector<8x128xf32>
      %23 = arith.addf %20, %22 : vector<8x128xf32>
      %c0_16 = arith.constant 0 : index
      %c0_17 = arith.constant 0 : index
      %24 = vector.load %arg7[%c0_16, %c0_17] : memref<8x128xf32, #tpu.memory_space<vmem>>, vector<8x128xf32>
      tpu.vector_store %arg7[%c0_16, %c0_17], %23 {strides = array<i32>} : memref<8x128xf32, #tpu.memory_space<vmem>>, vector<8x128xf32>,
    } else {
    }
    return
  }
  func.func @transform_0(%arg0: i32, %arg1: i32, %arg2: i32) -> (i32, i32) {
    %c0_i32 = arith.constant 0 : i32
    %c0_i32_0 = arith.constant 0 : i32
    return %arg0, %c0_i32 : i32, i32
  }
  func.func @transform_1(%arg0: i32, %arg1: i32, %arg2: i32) -> (i32, i32) {
    %c0_i32 = arith.constant 0 : i32
    %c0_i32_0 = arith.constant 0 : i32
    %c0_i32_1 = arith.constant 0 : i32
    return %c0_i32, %c0_i32_0 : i32, i32
  }
  func.func @transform_2(%arg0: i32, %arg1: i32, %arg2: i32) -> (i32, i32) {
    %c0_i32 = arith.constant 0 : i32
    return %arg2, %arg1 : i32, i32
  }
  func.func @transform_3(%arg0: i32, %arg1: i32, %arg2: i32) -> (i32, i32) {
    %c0_i32 = arith.constant 0 : i32
    %c0_i32_0 = arith.constant 0 : i32
    return %c0_i32, %arg1 : i32, i32
  }
  func.func @transform_4(%arg0: i32, %arg1: i32, %arg2: i32) -> (i32, i32) {
    %c0_i32 = arith.constant 0 : i32
    return %arg0, %arg1 : i32, i32
  }
}

module attributes {stable_mosaic.version = 11 : i64} {
  func.func @_bn_stats_kernel(%arg0: i32, %arg1: i32, %arg2: memref<8x128xf32, #tpu.memory_space<vmem>>, %arg3: memref<2x128xf32, #tpu.memory_space<vmem>>, %arg4: memref<2x128xf32, #tpu.memory_space<vmem>>) attributes {dimension_semantics = [#tpu.dimension_semantics<parallel>, #tpu.dimension_semantics<arbitrary>], iteration_bounds = array<i64: 1, 1>, scalar_prefetch = 0 : i64, scratch_operands = 1 : i64, tpu.core_type = #tpu.core_type<tc>, window_params = [{transform_indices = @transform_0, window_bounds = array<i64: 8, 128>}, {transform_indices = @transform_1, window_bounds = array<i64: 2, 128>}]} {
    %c0_i32 = arith.constant 0 : i32
    %0 = arith.cmpi eq, %arg1, %c0_i32 : i32
    %1 = arith.extui %0 : i1 to i32
    %c0_i32_0 = arith.constant 0 : i32
    %2 = arith.cmpi ne, %1, %c0_i32_0 : i32
    scf.if %2 {
      %cst_12 = arith.constant 0.000000e+00 : f32
      %18 = vector.broadcast %cst_12 : f32 to vector<2x128xf32>
      %c0_13 = arith.constant 0 : index
      %c0_14 = arith.constant 0 : index
      %19 = vector.load %arg4[%c0_13, %c0_14] : memref<2x128xf32, #tpu.memory_space<vmem>>, vector<2x128xf32>
      tpu.vector_store %arg4[%c0_13, %c0_14], %18 {strides = array<i32>} : memref<2x128xf32, #tpu.memory_space<vmem>>, vector<2x128xf32>,
    } else {
    }
    %c0 = arith.constant 0 : index
    %c0_1 = arith.constant 0 : index
    %3 = vector.load %arg2[%c0, %c0_1] : memref<8x128xf32, #tpu.memory_space<vmem>>, vector<8x128xf32>
    %c0_2 = arith.constant 0 : index
    %c0_3 = arith.constant 0 : index
    %4 = vector.load %arg4[%c0_2, %c0_3] : memref<2x128xf32, #tpu.memory_space<vmem>>, vector<1x128xf32>
    %cst = arith.constant dense<0.000000e+00> : vector<128xf32>
    %5 = vector.multi_reduction <add>, %3, %cst [0] : vector<8x128xf32> to vector<128xf32>
    %6 = vector.shape_cast %5 : vector<128xf32> to vector<1x128xf32>
    %7 = arith.addf %4, %6 : vector<1x128xf32>
    %c0_4 = arith.constant 0 : index
    %c0_5 = arith.constant 0 : index
    %8 = vector.load %arg4[%c0_4, %c0_5] : memref<2x128xf32, #tpu.memory_space<vmem>>, vector<1x128xf32>
    tpu.vector_store %arg4[%c0_4, %c0_5], %7 {strides = array<i32>} : memref<2x128xf32, #tpu.memory_space<vmem>>, vector<1x128xf32>,
    %c1 = arith.constant 1 : index
    %c0_6 = arith.constant 0 : index
    %9 = vector.load %arg4[%c1, %c0_6] : memref<2x128xf32, #tpu.memory_space<vmem>>, vector<1x128xf32>
    %10 = arith.mulf %3, %3 : vector<8x128xf32>
    %cst_7 = arith.constant dense<0.000000e+00> : vector<128xf32>
    %11 = vector.multi_reduction <add>, %10, %cst_7 [0] : vector<8x128xf32> to vector<128xf32>
    %12 = vector.shape_cast %11 : vector<128xf32> to vector<1x128xf32>
    %13 = arith.addf %9, %12 : vector<1x128xf32>
    %c1_8 = arith.constant 1 : index
    %c0_9 = arith.constant 0 : index
    %14 = vector.load %arg4[%c1_8, %c0_9] : memref<2x128xf32, #tpu.memory_space<vmem>>, vector<1x128xf32>
    tpu.vector_store %arg4[%c1_8, %c0_9], %13 {strides = array<i32>} : memref<2x128xf32, #tpu.memory_space<vmem>>, vector<1x128xf32>,
    %c0_i32_10 = arith.constant 0 : i32
    %15 = arith.cmpi eq, %arg1, %c0_i32_10 : i32
    %16 = arith.extui %15 : i1 to i32
    %c0_i32_11 = arith.constant 0 : i32
    %17 = arith.cmpi ne, %16, %c0_i32_11 : i32
    scf.if %17 {
      %c0_12 = arith.constant 0 : index
      %c0_13 = arith.constant 0 : index
      %18 = vector.load %arg4[%c0_12, %c0_13] : memref<2x128xf32, #tpu.memory_space<vmem>>, vector<1x128xf32>
      %cst_14 = arith.constant 1.250000e-01 : f32
      %19 = vector.broadcast %cst_14 : f32 to vector<1x128xf32>
      %20 = arith.mulf %18, %19 : vector<1x128xf32>
      %c1_15 = arith.constant 1 : index
      %c0_16 = arith.constant 0 : index
      %21 = vector.load %arg4[%c1_15, %c0_16] : memref<2x128xf32, #tpu.memory_space<vmem>>, vector<1x128xf32>
      %cst_17 = arith.constant 1.250000e-01 : f32
      %22 = vector.broadcast %cst_17 : f32 to vector<1x128xf32>
      %23 = arith.mulf %21, %22 : vector<1x128xf32>
      %24 = arith.mulf %20, %20 : vector<1x128xf32>
      %25 = arith.subf %23, %24 : vector<1x128xf32>
      %c0_18 = arith.constant 0 : index
      %c0_19 = arith.constant 0 : index
      %26 = vector.load %arg3[%c0_18, %c0_19] : memref<2x128xf32, #tpu.memory_space<vmem>>, vector<1x128xf32>
      tpu.vector_store %arg3[%c0_18, %c0_19], %20 {strides = array<i32>} : memref<2x128xf32, #tpu.memory_space<vmem>>, vector<1x128xf32>,
      %cst_20 = arith.constant 0.000000e+00 : f32
      %27 = vector.broadcast %cst_20 : f32 to vector<1x128xf32>
      %28 = arith.maximumf %25, %27 : vector<1x128xf32>
      %cst_21 = arith.constant 9.99999974E-6 : f32
      %29 = vector.broadcast %cst_21 : f32 to vector<1x128xf32>
      %30 = arith.addf %28, %29 : vector<1x128xf32>
      %31 = math.rsqrt %30 : vector<1x128xf32>
      %c1_22 = arith.constant 1 : index
      %c0_23 = arith.constant 0 : index
      %32 = vector.load %arg3[%c1_22, %c0_23] : memref<2x128xf32, #tpu.memory_space<vmem>>, vector<1x128xf32>
      tpu.vector_store %arg3[%c1_22, %c0_23], %31 {strides = array<i32>} : memref<2x128xf32, #tpu.memory_space<vmem>>, vector<1x128xf32>,
    } else {
    }
    return
  }
  func.func @transform_0(%arg0: i32, %arg1: i32) -> (i32, i32) {
    %c0_i32 = arith.constant 0 : i32
    return %arg1, %arg0 : i32, i32
  }
  func.func @transform_1(%arg0: i32, %arg1: i32) -> (i32, i32) {
    %c0_i32 = arith.constant 0 : i32
    %c0_i32_0 = arith.constant 0 : i32
    return %c0_i32, %arg0 : i32, i32
  }
}

</mosaic_0001>

<bundles_post_ra>
// kernel: yagaodirac_linear_forward.2
= control target key start
LH: loop header
LB: loop body
LE: loop exit
PB: predicated region body
PF: predicated region fallthrough
CT: control target
= control target key end

     0   :  { %v63_v0 = vmov 0.0   ;;  %s83_s0 = inlined_call_operand.vmem [shape: f32[8,128], index: 0, kind: input, shape index: {}]   ;;  %s84_s1 = inlined_call_operand.vmem [shape: f32[2,128], index: 1, kind: output, shape index: {}]  }
   0x1   :  { %12 = vst [vmem:[#allocation2] sm:$0x3] %v63_v0  ;;  %v13_v1 = vld [vmem:[%s83_s0] sm:$0xff] }
   0x2   :  { %v15_v2 = vrot.slane %v13_v1, 4  ;;  %v24_v3 = vmul.f32 %v13_v1, %v13_v1 }
   0x4   :  { %v16_v4 = vadd.f32 %v15_v2, %v13_v1  ;;  %v25_v5 = vrot.slane %v24_v3, 4 }
   0x6   :  { %v17_v6 = vrot.slane %v16_v4, 2  ;;  %v26_v7 = vadd.f32 %v25_v5, %v24_v3 }
   0x8   :  { %v18_v8 = vadd.f32 %v17_v6, %v16_v4  ;;  %v27_v9 = vrot.slane %v26_v7, 2  ;;  %v14_v12 = vld [vmem:[#allocation2] sm:$0x1]  ;;  %v23_v17 = vld [vmem:[#allocation2 + $0x1] sm:$0x1] }
   0xa   :  { %v19_v10 = vrot.slane %v18_v8, 1  ;;  %v28_v11 = vadd.f32 %v27_v9, %v26_v7 }
   0xc   :  { %v20_v13 = vadd.f32 %v19_v10, %v18_v8  ;;  %v29_v14 = vrot.slane %v28_v11, 1 }
   0xe   :  { %v21_v15 = vadd.f32 %v20_v13, %v14_v12  ;;  %v30_v16 = vadd.f32 %v29_v14, %v28_v11 }
  0x10   :  { %22 = vst [vmem:[#allocation2] sm:$0x1] %v21_v15  ;;  %v31_v18 = vadd.f32 %v30_v16, %v23_v17 }
  0x12   :  { %32 = vst [vmem:[#allocation2 + $0x1] sm:$0x1] %v31_v18 }
  0x17   :  { %v36_v19 = vld [vmem:[#allocation2] sm:$0x1] }
  0x18   :  { %v37_v20 = vmul.f32 0.125, %v36_v19 }
  0x19   :  { %v38_v21 = vld [vmem:[#allocation2 + $0x1] sm:$0x1] }
  0x1a   :  { %v39_v22 = vmul.f32 0.125, %v38_v21  ;;  %v40_v23 = vmul.f32 %v37_v20, %v37_v20  ;;  %42 = vst [vmem:[%s84_s1] sm:$0x1] %v37_v20 }
  0x1c   :  { %v41_v24 = vsub.f32 %v39_v22, %v40_v23 }
  0x1e   :  { %v43_v25 = vmax.f32 %v41_v24, 0.0 }
  0x20   :  { %v44_v26 = vadd.f32 1e-05, %v43_v25 }
  0x22   :  { %61 = vrsqrt.f32 %v44_v26  ;;  %vm51_vm1 = vweird.f32 %v44_v26 }
  0x28   :  { %v62_v27 = vpop.eup %61 }
  0x29   :  { %v46_v28 = vmul.f32 %v62_v27, %v44_v26  ;;  %vm52_vm0 = vweird.f32 %v62_v27 }
  0x2a   :  { %vm53_vm2 = vmor %vm51_vm1, %vm52_vm0 }
  0x2b   :  { %v47_v29 = vmul.f32 %v62_v27, %v46_v28 }
  0x2d   :  { %v48_v30 = vmul.f32 0.5, %v47_v29 }
  0x2f   :  { %v49_v31 = vsub.f32 1.5, %v48_v30 }
  0x31   :  { %v50_v32 = vmul.f32 %v62_v27, %v49_v31 }
  0x33   :  { %v54_v33 = vsel %vm53_vm2, %v62_v27, %v50_v32 }
  0x34   :  { %55 = vst [vmem:[%s84_s1 + $0x1] sm:$0x1] %v54_v33 }

// kernel: yagaodirac_linear_forward.3
= control target key start
LH: loop header
LB: loop body
LE: loop exit
PB: predicated region body
PF: predicated region fallthrough
CT: control target
= control target key end

     0   :  { %9 = vsyncpa [#allocation5], 0  ;;  %s314_s0 = inlined_call_operand.vmem [shape: f32[8,128], index: 0, kind: input, shape index: {}]   ;;  %s315_s1 = inlined_call_operand.vmem [shape: f32[2,128], index: 1, kind: input, shape index: {}]   ;;  %s316_s2 = inlined_call_operand.hbm [shape: bf16[128,128], index: 2, kind: input, shape index: {}]   ;;  %s317_s3 = inlined_call_operand.vmem [shape: f32[1,128], index: 3, kind: input, shape index: {}]   ;;  %s318_s4 = inlined_call_operand.hbm [shape: f32[8,128], index: 4, kind: output, shape index: {}]  }
   0x1   :  { %10 = vsyncpa [#allocation6], 0  ;;  %s19_s17 = sshll.u32 %s316_s2, 4  ;;  %s267_s18 = smov [#allocation4]   ;;  %s20_s17 = int_to_ptr.hbm [resolvable:$true] %s19_s17 }
   0x2   :  { %s21_s19 = sshll.u32 %s267_s18, 4  ;;  %s268_s20 = smov 64   ;;  %s22_s19 = int_to_ptr.vmem [resolvable:$true] %s21_s19 }
   0x3   :  { %s269_s21 = smov 4  }
   0x4   :  { %27 = dma.hbm_to_vmem [thread:$0]  %s20_s17, 1024, %s22_s19, [#allocation5], %s268_s20, %s268_s20, %s269_s21  }
   0x5   :  { %263 = dma.done.wait [#allocation5], 1024  }
   0x6   :  { %264 = vsyncadd [#allocation5], 4294966272  ;;  %v207_v0 = vld [vmem:[#allocation4 + $0x38] sm:$0xff]  ;;  %v206_v1 = vld [vmem:[#allocation4 + $0x30] sm:$0xff]  ;;  %s270_s27 = smov [#allocation7]   ;;  %s156_s5 = sshll.u32 %s318_s4, 4  ;;  %s157_s5 = int_to_ptr.hbm [resolvable:$true] %s156_s5 }
   0x7   :  { %124 = vmatpush.bf16.msra.mxu0 %v207_v0  ;;  %v42_v2 = vld [vmem:[%s314_s0] sm:$0xff]  ;;  %v205_v6 = vld [vmem:[#allocation4 + $0x28] sm:$0xff]  ;;  %v202_v11 = vld [vmem:[#allocation4 + $0x10] sm:$0xff]  ;;  %s154_s28 = sshll.u32 %s270_s27, 4  ;;  %s155_s28 = int_to_ptr.vmem [resolvable:$true] %s154_s28 }
   0x8   :  { %v212_v3 = vld [vmem:[%s315_s1] ss:$0 sm:$0xff]  ;;  %v213_v4 = vld [vmem:[%s315_s1 + $0x1] ss:$0 sm:$0xff]  ;;  %v204_v9 = vld [vmem:[#allocation4 + $0x20] sm:$0xff] }
   0x9   :  { %v44_v5 = vsub.f32 %v42_v2, %v212_v3  ;;  %v203_v10 = vld [vmem:[#allocation4 + $0x18] sm:$0xff]  ;;  %v201_v12 = vld [vmem:[#allocation4 + $0x8] sm:$0xff]  ;;  %v200_v13 = vld [vmem:[#allocation4] sm:$0xff] }
   0xa   :  { %v214_v15 = vld [vmem:[%s317_s3] ss:$0 sm:$0xff] }
   0xb   :  { %125 = vmatpush.bf16.msra.mxu0 %v206_v1  ;;  %v46_v7 = vmul.f32 %v213_v4, %v44_v5 }
   0xd   :  { %v47_v8 = vpack.c.bf16 %v46_v7, %v46_v7 }
   0xf   :  { %126 = vmatpush.bf16.msra.mxu0 %v205_v6  ;;  %48 = vst [vmem:[#allocation3] sm:$0xf] %v47_v8 }
  0x13   :  { %127 = vmatpush.bf16.msra.mxu0 %v204_v9 }
  0x16   :  { %v59_v14 = vld [vmem:[#allocation3] sm:$0xf] }
  0x17   :  { %128 = vmatpush.bf16.msra.mxu0 %v203_v10 }
  0x1b   :  { %129 = vmatpush.bf16.msra.mxu0 %v202_v11 }
  0x1f   :  { %130 = vmatpush.bf16.msra.mxu0 %v201_v12 }
  0x23   :  { %131 = vmatpush.bf16.msra.mxu0 %v200_v13 }
  0x26   :  { %132 = vmatmul.bf16.vlgmr.msra.gmra.mxu0 %v59_v14 }
  0xa3   :  { %v133_v16 = vpop.f32.mrf.mxu0 }
  0xa4   :  { %v147_v17 = vadd.f32 %v214_v15, %v133_v16 }
  0xa6   :  { %148 = vst [vmem:[#allocation7] sm:$0xff] %v147_v17 }
  0xa7   :  { %159 = dma.vmem_to_hbm [thread:$0]  %s155_s28, 128, %s157_s5, [#allocation6]  }
  0xab   :  { %v135_v18 = vpop.f32.mrf.mxu0 }
  0xac   :  { %265 = dma.done.wait [#allocation6], 128  }
  0xad   :  { %266 = vsyncadd [#allocation6], 4294967168 }
  0xae   :  { %164 = vsyncpa [#allocation5], 1 }
  0xaf   :  { %165 = vsyncpa [#allocation6], 1 }

</bundles_post_ra>
